<compile_context>
chip_gen: v5e
topology: v5e:2x2
jax: 0.10.0
libtpu: 0.0.40
codegen_flags: <defaults>
</compile_context>

<pallas_src>
import functools

import jax
import jax.numpy as jnp
from jax.experimental import pallas as pl
from jax.experimental.pallas import tpu as pltpu


# ----------------------------------------------------------------------------
# Pallas kernel: per-prior cross-entropy (positives zeroed, as in the
# reference) and per-prior smooth-L1 localization loss (masked by positives).
# Priors live in the lane axis; classes / box coords live in sublanes.
# ----------------------------------------------------------------------------
def _ssd_loss_kernel(conf_ref, label_ref, locp_ref, loct_ref, out_ref):
    logits = conf_ref[...].astype(jnp.float32)       # (C, T)  f32 compute
    labels = label_ref[...]                          # (1, T)  int32

    # --- cross entropy over the class (sublane) axis ---
    m = jnp.max(logits, axis=0, keepdims=True)                       # (1, T)
    lse = m + jnp.log(jnp.sum(jnp.exp(logits - m), axis=0, keepdims=True))
    class_ids = jax.lax.broadcasted_iota(jnp.int32, logits.shape, 0)  # (C, T)
    true_logit = jnp.sum(jnp.where(class_ids == labels, logits, 0.0),
                         axis=0, keepdims=True)                       # (1, T)
    ce = lse - true_logit                                             # (1, T)

    pos = (labels > 0).astype(jnp.float32)                            # (1, T)
    # Reference sets conf_loss[pos] = 0 before mining/summing.
    conf_row = ce * (1.0 - pos)

    # --- smooth L1 (beta = 1.0) summed over the 4 coord sublanes ---
    d = locp_ref[...].astype(jnp.float32) - loct_ref[...].astype(jnp.float32)
    ad = jnp.abs(d)
    sl1 = jnp.where(ad < 1.0, 0.5 * d * d, ad - 0.5)                  # (4, T)
    loc_row = pos * jnp.sum(sl1, axis=0, keepdims=True)               # (1, T)

    # One lane-dense (2, T) store: row 0 = conf loss, row 1 = loc loss.
    out_ref[...] = jnp.concatenate([conf_row, loc_row], axis=0)


def _pick_tile(n, max_tile=2048):
    """Lane-dense row tile: multiple of 128, large, but keep >= 2 grid steps
    when there is enough work (v7x has 2 TensorCores)."""
    if n <= 128:
        return 128
    half = (n // 2) // 128 * 128
    return int(max(128, min(max_tile, half)))


def _run_ssd_loss_kernel(conf_cn, labels_1n, locp_4n, loct_4n, *, tile=None):
    c, n = conf_cn.shape
    if tile is None:
        tile = _pick_tile(n)

    # Pad the prior axis up to a multiple of the tile. Padded labels are 0
    # (pos mask 0), so padded rows contribute nothing to the loc sum and their
    # conf rows are sliced off before mining.
    n_pad = pl.cdiv(n, tile) * tile
    if n_pad != n:
        pad = n_pad - n
        conf_cn = jnp.pad(conf_cn, ((0, 0), (0, pad)))
        labels_1n = jnp.pad(labels_1n, ((0, 0), (0, pad)))
        locp_4n = jnp.pad(locp_4n, ((0, 0), (0, pad)))
        loct_4n = jnp.pad(loct_4n, ((0, 0), (0, pad)))

    grid = (n_pad // tile,)
    out = pl.pallas_call(
        _ssd_loss_kernel,
        out_shape=jax.ShapeDtypeStruct((2, n_pad), jnp.float32),
        grid_spec=pltpu.PrefetchScalarGridSpec(
            num_scalar_prefetch=0,
            grid=grid,
            in_specs=[
                pl.BlockSpec((c, tile), lambda i: (0, i)),   # logits (C, T)
                pl.BlockSpec((1, tile), lambda i: (0, i)),   # labels (1, T)
                pl.BlockSpec((4, tile), lambda i: (0, i)),   # loc pred (4, T)
                pl.BlockSpec((4, tile), lambda i: (0, i)),   # loc tgt  (4, T)
            ],
            out_specs=pl.BlockSpec((2, tile), lambda i: (0, i)),
        ),
        compiler_params=pltpu.CompilerParams(
            dimension_semantics=("parallel",)),
    )(conf_cn, labels_1n, locp_4n, loct_4n)

    conf_loss = out[0, :n]                 # per-prior CE, positives zeroed
    loc_loss = jnp.sum(out[1, :n])         # scalar smooth-L1 over positives
    return conf_loss, loc_loss


# ----------------------------------------------------------------------------
# Plain-JAX glue: box matching / encoding (mirrors the PyTorch helpers).
# ----------------------------------------------------------------------------
def box_iou(boxes1, boxes2):
    area1 = (boxes1[:, 2] - boxes1[:, 0]) * (boxes1[:, 3] - boxes1[:, 1])
    area2 = (boxes2[:, 2] - boxes2[:, 0]) * (boxes2[:, 3] - boxes2[:, 1])
    lt = jnp.maximum(boxes1[:, None, :2], boxes2[:, :2])
    rb = jnp.minimum(boxes1[:, None, 2:], boxes2[:, 2:])
    wh = jnp.clip(rb - lt, 0.0, None)
    inter = wh[:, :, 0] * wh[:, :, 1]
    union = area1[:, None] + area2 - inter
    return inter / union


def _box_to_centerwidth(boxes):
    width = boxes[:, 2] - boxes[:, 0]
    height = boxes[:, 3] - boxes[:, 1]
    ctr_x = boxes[:, 0] + width / 2
    ctr_y = boxes[:, 1] + height / 2
    return jnp.stack([ctr_x, ctr_y, width, height], axis=1)


def encode_boxes(matched_boxes, default_boxes):
    g = _box_to_centerwidth(matched_boxes)
    d = _box_to_centerwidth(default_boxes)
    xy = (g[:, :2] - d[:, :2]) / (d[:, 2:] + 1e-08)
    wh = jnp.log(g[:, 2:] / (d[:, 2:] + 1e-08))
    return jnp.concatenate([xy, wh], axis=1)


def _match_single(truths, labels, default_boxes, threshold):
    overlaps = box_iou(default_boxes, truths)           # (P, M)
    best_truth_overlap = jnp.max(overlaps, axis=1)
    best_truth_idx = jnp.argmax(overlaps, axis=1)
    best_prior_idx = jnp.argmax(overlaps, axis=0)       # (M,)

    def body(j, carry):
        bti, bto = carry
        p = best_prior_idx[j]
        return bti.at[p].set(j), bto.at[p].set(2.0)

    best_truth_idx, best_truth_overlap = jax.lax.fori_loop(
        0, truths.shape[0], body, (best_truth_idx, best_truth_overlap))

    matches = truths[best_truth_idx]
    conf = labels[best_truth_idx]
    conf = jnp.where(best_truth_overlap < threshold, 0, conf)
    loc = encode_boxes(matches, default_boxes)
    return loc, conf.astype(jnp.int32)


# ----------------------------------------------------------------------------
# SSD loss forward (reproduces SSD_loss.forward).
# ----------------------------------------------------------------------------
@functools.partial(jax.jit, static_argnames=("num_classes",))
def ssd_loss(loc_preds, conf_preds, gt_boxes, gt_labels, default_boxes,
             num_classes=21):
    B, P, _ = loc_preds.shape
    threshold = 0.5
    neg_pos_ratio = 3

    loc_t, conf_t = jax.vmap(_match_single, in_axes=(0, 0, None, None))(
        gt_boxes, gt_labels, default_boxes, threshold)   # (B,P,4), (B,P)

    pos = conf_t > 0                                     # (B, P)
    N = B * P

    # --- Pallas kernel: priors in lanes, classes/coords in sublanes ---
    # (wrapper-side transposes are layout plumbing; kernel upcasts to f32)
    conf_cn = conf_preds.reshape(N, num_classes).T       # (C, N)
    labels_1n = conf_t.reshape(1, N).astype(jnp.int32)   # (1, N)
    locp_4n = loc_preds.reshape(N, 4).T                  # (4, N)
    loct_4n = loc_t.reshape(N, 4).T                      # (4, N)

    conf_flat, loc_loss = _run_ssd_loss_kernel(conf_cn, labels_1n,
                                               locp_4n, loct_4n)
    conf_loss = conf_flat.reshape(B, P)                  # CE, positives zeroed

    # --- hard negative mining ---
    # TODO(synk): no native Pallas TPU sort primitive; rank computed in JAX.
    # Single argsort + scatter builds the descending rank (exactly equivalent
    # to the reference's double sort, one full sort cheaper).
    order = jnp.argsort(-conf_loss, axis=1)              # (B, P) desc. indices
    idx_rank = jnp.zeros_like(order).at[
        jnp.arange(B)[:, None], order].set(jnp.arange(P)[None, :])

    num_pos = jnp.sum(pos.astype(jnp.int32), axis=1)     # (B,)
    num_neg = jnp.minimum(neg_pos_ratio * num_pos, P - 1)
    neg = idx_rank < num_neg[:, None]

    pos_conf_loss = jnp.sum(jnp.where(pos, conf_loss, 0.0))  # == 0 (ref zeroes pos)
    neg_conf_loss = jnp.sum(jnp.where(neg, conf_loss, 0.0))

    epsilon = 1e-06
    loss = (loc_loss + pos_conf_loss + neg_conf_loss) / (
        jnp.sum(num_pos).astype(jnp.float32) + epsilon)
    return loss


# ----------------------------------------------------------------------------
# Deterministic setup + smoke test.
# ----------------------------------------------------------------------------
def make_default_boxes():
    # 8x8 grid of centers x 2 box sizes = 128 priors, corner form, clipped [0,1].
    gs = 8
    xs = (jnp.arange(gs, dtype=jnp.float32) + 0.5) / gs
    cy, cx = jnp.meshgrid(xs, xs, indexing="ij")
    cx = cx.reshape(-1)
    cy = cy.reshape(-1)
    boxes = []
    for s in (0.1, 0.25):
        x1 = jnp.clip(cx - s / 2, 0.0, 1.0)
        y1 = jnp.clip(cy - s / 2, 0.0, 1.0)
        x2 = jnp.clip(cx + s / 2, 0.0, 1.0)
        y2 = jnp.clip(cy + s / 2, 0.0, 1.0)
        boxes.append(jnp.stack([x1, y1, x2, y2], axis=1))
    return jnp.concatenate(boxes, axis=0)                # (128, 4)


if __name__ == "__main__":
    num_classes = 21
    B, P, M = 2, 128, 3

    key = jax.random.PRNGKey(0)
    k1, k2, k3, k4, k5 = jax.random.split(key, 5)

    default_boxes = make_default_boxes()                 # (P, 4)

    loc_preds = jax.random.normal(k1, (B, P, 4), dtype=jnp.float32) * 0.1
    conf_preds = jax.random.normal(k2, (B, P, num_classes), dtype=jnp.float32)

    # Ground-truth boxes: valid corner-form boxes inside [0, 1].
    ctr = jax.random.uniform(k3, (B, M, 2), minval=0.25, maxval=0.75)
    wh = jax.random.uniform(k4, (B, M, 2), minval=0.1, maxval=0.3)
    gt_boxes = jnp.concatenate([ctr - wh / 2, ctr + wh / 2], axis=-1)   # (B, M, 4)
    gt_labels = jax.random.randint(k5, (B, M), 1, num_classes).astype(jnp.int32)

    loss = ssd_loss(loc_preds, conf_preds, gt_boxes, gt_labels,
                    default_boxes, num_classes=num_classes)
    loss = jax.block_until_ready(loss)
    assert jnp.isfinite(loss)
    print("KERNEL_OK")
</pallas_src>

<mosaic_0001>
module attributes {stable_mosaic.version = 11 : i64} {
  func.func @_ssd_loss_kernel(%arg0: i32, %arg1: memref<21x128xf32, #tpu.memory_space<vmem>>, %arg2: memref<1x128xi32, #tpu.memory_space<vmem>>, %arg3: memref<4x128xf32, #tpu.memory_space<vmem>>, %arg4: memref<4x128xf32, #tpu.memory_space<vmem>>, %arg5: memref<2x128xf32, #tpu.memory_space<vmem>>) attributes {dimension_semantics = [#tpu.dimension_semantics<parallel>], iteration_bounds = array<i64: 2>, scalar_prefetch = 0 : i64, scratch_operands = 0 : i64, tpu.core_type = #tpu.core_type<tc>, window_params = [{transform_indices = @transform_0, window_bounds = array<i64: 21, 128>}, {transform_indices = @transform_1, window_bounds = array<i64: 1, 128>}, {transform_indices = @transform_2, window_bounds = array<i64: 4, 128>}, {transform_indices = @transform_3, window_bounds = array<i64: 4, 128>}, {transform_indices = @transform_4, window_bounds = array<i64: 2, 128>}]} {
    %c0 = arith.constant 0 : index
    %c0_0 = arith.constant 0 : index
    %0 = vector.load %arg1[%c0, %c0_0] : memref<21x128xf32, #tpu.memory_space<vmem>>, vector<21x128xf32>
    %c0_1 = arith.constant 0 : index
    %c0_2 = arith.constant 0 : index
    %1 = vector.load %arg2[%c0_1, %c0_2] : memref<1x128xi32, #tpu.memory_space<vmem>>, vector<1x128xi32>
    %cst = arith.constant dense<0xFF800000> : vector<128xf32>
    %2 = vector.multi_reduction <maximumf>, %0, %cst [0] : vector<21x128xf32> to vector<128xf32>
    %3 = vector.shape_cast %2 : vector<128xf32> to vector<1x128xf32>
    %4 = vector.broadcast %3 : vector<1x128xf32> to vector<21x128xf32>
    %5 = arith.subf %0, %4 : vector<21x128xf32>
    %6 = math.exp %5 : vector<21x128xf32>
    %cst_3 = arith.constant dense<0.000000e+00> : vector<128xf32>
    %7 = vector.multi_reduction <add>, %6, %cst_3 [0] : vector<21x128xf32> to vector<128xf32>
    %8 = vector.shape_cast %7 : vector<128xf32> to vector<1x128xf32>
    %9 = math.log %8 : vector<1x128xf32>
    %10 = arith.addf %3, %9 : vector<1x128xf32>
    %11 = tpu.iota {dimensions = array<i32: 0>} : vector<21x128xi32>
    %12 = vector.broadcast %1 : vector<1x128xi32> to vector<21x128xi32>
    %13 = arith.cmpi eq, %11, %12 : vector<21x128xi32>
    %cst_4 = arith.constant 0.000000e+00 : f32
    %14 = vector.broadcast %cst_4 : f32 to vector<21x128xf32>
    %15 = arith.select %13, %0, %14 : vector<21x128xi1>, vector<21x128xf32>
    %cst_5 = arith.constant dense<0.000000e+00> : vector<128xf32>
    %16 = vector.multi_reduction <add>, %15, %cst_5 [0] : vector<21x128xf32> to vector<128xf32>
    %17 = vector.shape_cast %16 : vector<128xf32> to vector<1x128xf32>
    %18 = arith.subf %10, %17 : vector<1x128xf32>
    %c0_i32 = arith.constant 0 : i32
    %19 = vector.broadcast %c0_i32 : i32 to vector<1x128xi32>
    %20 = arith.cmpi sgt, %1, %19 : vector<1x128xi32>
    %21 = arith.extui %20 : vector<1x128xi1> to vector<1x128xi32>
    %22 = arith.sitofp %21 : vector<1x128xi32> to vector<1x128xf32>
    %cst_6 = arith.constant 1.000000e+00 : f32
    %23 = vector.broadcast %cst_6 : f32 to vector<1x128xf32>
    %24 = arith.subf %23, %22 : vector<1x128xf32>
    %25 = arith.mulf %18, %24 : vector<1x128xf32>
    %c0_7 = arith.constant 0 : index
    %c0_8 = arith.constant 0 : index
    %26 = vector.load %arg3[%c0_7, %c0_8] : memref<4x128xf32, #tpu.memory_space<vmem>>, vector<4x128xf32>
    %c0_9 = arith.constant 0 : index
    %c0_10 = arith.constant 0 : index
    %27 = vector.load %arg4[%c0_9, %c0_10] : memref<4x128xf32, #tpu.memory_space<vmem>>, vector<4x128xf32>
    %28 = arith.subf %26, %27 : vector<4x128xf32>
    %29 = math.absf %28 : vector<4x128xf32>
    %cst_11 = arith.constant 1.000000e+00 : f32
    %30 = vector.broadcast %cst_11 : f32 to vector<4x128xf32>
    %31 = arith.cmpf olt, %29, %30 : vector<4x128xf32>
    %cst_12 = arith.constant 5.000000e-01 : f32
    %32 = vector.broadcast %cst_12 : f32 to vector<4x128xf32>
    %33 = arith.mulf %32, %28 : vector<4x128xf32>
    %34 = arith.mulf %33, %28 : vector<4x128xf32>
    %cst_13 = arith.constant 5.000000e-01 : f32
    %35 = vector.broadcast %cst_13 : f32 to vector<4x128xf32>
    %36 = arith.subf %29, %35 : vector<4x128xf32>
    %37 = arith.select %31, %34, %36 : vector<4x128xi1>, vector<4x128xf32>
    %cst_14 = arith.constant dense<0.000000e+00> : vector<128xf32>
    %38 = vector.multi_reduction <add>, %37, %cst_14 [0] : vector<4x128xf32> to vector<128xf32>
    %39 = vector.shape_cast %38 : vector<128xf32> to vector<1x128xf32>
    %40 = arith.mulf %22, %39 : vector<1x128xf32>
    %41 = tpu.concatenate %25, %40 in 0 : vector<1x128xf32>, vector<1x128xf32> -> vector<2x128xf32>
    %c0_15 = arith.constant 0 : index
    %c0_16 = arith.constant 0 : index
    %42 = vector.load %arg5[%c0_15, %c0_16] : memref<2x128xf32, #tpu.memory_space<vmem>>, vector<2x128xf32>
    tpu.vector_store %arg5[%c0_15, %c0_16], %41 {strides = array<i32>} : memref<2x128xf32, #tpu.memory_space<vmem>>, vector<2x128xf32>,
    return
  }
  func.func @transform_0(%arg0: i32) -> (i32, i32) {
    %c0_i32 = arith.constant 0 : i32
    %c0_i32_0 = arith.constant 0 : i32
    return %c0_i32, %arg0 : i32, i32
  }
  func.func @transform_1(%arg0: i32) -> (i32, i32) {
    %c0_i32 = arith.constant 0 : i32
    %c0_i32_0 = arith.constant 0 : i32
    return %c0_i32, %arg0 : i32, i32
  }
  func.func @transform_2(%arg0: i32) -> (i32, i32) {
    %c0_i32 = arith.constant 0 : i32
    %c0_i32_0 = arith.constant 0 : i32
    return %c0_i32, %arg0 : i32, i32
  }
  func.func @transform_3(%arg0: i32) -> (i32, i32) {
    %c0_i32 = arith.constant 0 : i32
    %c0_i32_0 = arith.constant 0 : i32
    return %c0_i32, %arg0 : i32, i32
  }
  func.func @transform_4(%arg0: i32) -> (i32, i32) {
    %c0_i32 = arith.constant 0 : i32
    %c0_i32_0 = arith.constant 0 : i32
    return %c0_i32, %arg0 : i32, i32
  }
}

</mosaic_0001>

<bundles_post_ra>
// kernel: neg.1
= control target key start
LH: loop header
LB: loop body
LE: loop exit
PB: predicated region body
PF: predicated region fallthrough
CT: control target
= control target key end

     0   :  { %s24_s0 = inlined_call_operand.vmem [shape: f32[2,128], index: 0, kind: input, shape index: {}]   ;;  %s25_s1 = inlined_call_operand.vmem [shape: f32[2,128], index: 1, kind: output, shape index: {}]  }
   0x1   :  { %v2_v0 = vld [vmem:[%s24_s0] sm:$0x3] }
   0x2   :  { %v5_v1 = vxor.u32 2147483648, %v2_v0 }
   0x4   :  { %7 = vst [vmem:[%s25_s1] sm:$0x3] %v5_v1 }

// kernel: ssd_loss.1
= control target key start
LH: loop header
LB: loop body
LE: loop exit
PB: predicated region body
PF: predicated region fallthrough
CT: control target
= control target key end

     0   :  { %s563_s15 = smov 0   ;;  %s565_s16 = smov 0   ;;  %s644_s0 = inlined_call_operand.vmem [shape: f32[21,256], index: 0, kind: input, shape index: {}]   ;;  %s645_s1 = inlined_call_operand.vmem [shape: s32[1,256], index: 1, kind: input, shape index: {}]   ;;  %s646_s2 = inlined_call_operand.vmem [shape: f32[4,256], index: 2, kind: input, shape index: {}]   ;;  %s647_s3 = inlined_call_operand.vmem [shape: f32[4,256], index: 3, kind: input, shape index: {}]   ;;  %s648_s4 = inlined_call_operand.vmem [shape: f32[2,256], index: 4, kind: output, shape index: {}]  }
   0x1   :  { %s567_s17 = smov 0  }
   0x2 LB: > { %s464_s18 = sadd.s32 4294967295, %s535_s17   ;;  %s580_s19 = sadd.s32 1, %s535_s17   ;;  %s535_s17 = sphi %s567_s17, %s653_s17   ;;  %s531_s16 = sphi %s565_s16, %s652_s16   ;;  %s527_s15 = sphi %s563_s15, %s651_s15  }
   0x3   : > { %s18_s20 = ssub.s32 %s535_s17, %s580_s19  ;;  %s21_s21 = sadd.s32 1, %s531_s16 }
   0x4   : > { %p19_p0 = scmp.eq.s32.totalorder %s18_s20, 0  ;;  %p28_p1 = scmp.ne.s32.totalorder %s531_s16, %s527_s15 }
   0x5   : > { %p29_p2 = scmp.eq.s32.totalorder %s535_s17, 0  ;;  %p467_p4 = scmp.ge.s32.totalorder %s535_s17, 2 }
   0x6   : > { %s589_s22 = scalar_select %p19_p0, %s531_s16, %s21_s21  }
   0x7   : > { %p30_p3 = por %p29_p2, %p28_p1  ;;  %158 = sbr.rel (%p467_p4) target bundleno = 19 (0x13), region = 16 }
   0xc   : > { %161 = sbr.rel (!%p30_p3) target bundleno = 19 (0x13), region = 20  ;;  %s163_s23 = sand.u32 (%p30_p3), 1, %s531_s16  }
   0xd   : > { %s468_s24 = sshll.u32 (%p30_p3), %s535_s17, 3  ;;  %s477_s25 = smul.u32 (%p30_p3), 24, %s163_s23 }
   0xe   : > { %s167_s28 = scalar_lea.vmem (%p30_p3), %s644_s0, %s468_s24 }
   0xf   : > { %v200_v0 = vld [vmem:[%s167_s28] sm:$0xff] (%p30_p3)  ;;  %v202_v1 = vld [vmem:[%s167_s28 + $0x10] sm:$0xff] (%p30_p3)  ;;  %s165_s29 = scalar_lea.vmem (%p30_p3), [#allocation2], %s477_s25 }
  0x10   : > { %v204_v2 = vld [vmem:[%s167_s28 + $0x20] sm:$0xff] (%p30_p3)  ;;  %201 = vst [vmem:[%s165_s29] sm:$0xff] (%p30_p3), %v200_v0 }
  0x11   : > { %203 = vst [vmem:[%s165_s29 + $0x8] sm:$0xff] %v202_v1 }
  0x12   : > { %205 = vst [vmem:[%s165_s29 + $0x10] sm:$0xff] %v204_v2 }
  0x13 PF: > { %p469_p5 = scmp.ge.s32.totalorder %s535_s17, 1  ;;  %p230_p6 = scmp.lt.s32.totalorder %s535_s17, 3 }
  0x15   : > { %p231_p7 = pnand %p469_p5, %p230_p6 }
  0x16   : > { %s237_s30 = sand.u32 (!%p231_p7), 1, %s527_s15   ;;  %p272_p8 = scmp.lt.s32.totalorder (!%p231_p7), %s464_s18, 1 }
  0x17   : > { %234 = sbr.rel (%p231_p7) target bundleno = 90 (0x5a), region = 70 }
  0x18   : > { %s478_s5 = smul.u32 (!%p231_p7), 24, %s237_s30 }
  0x1a   : > { %s239_s6 = scalar_lea.vmem (!%p231_p7), [#allocation2], %s478_s5 }
  0x1c   : > { %s655_s18 = smov (!%p272_p8, %s464_s18), 1  ;;  %vm291_vm0 = vcmask 1044480   ;;  %v287_v3 = vld [vmem:[%s239_s6] sm:$0xff]  ;;  %v288_v4 = vld [vmem:[%s239_s6 + $0x8] sm:$0xff]  ;;  %v289_v5 = vld [vmem:[%s239_s6 + $0x10] sm:$0x1f]  ;;  %v322_v10 = vlaneseq }
  0x1d   : > { %s470_s7 = sshll.u32 %s655_s18, 2  ;;  %v292_v6 = vsel %vm291_vm0, %v289_v5, -inf  ;;  %v293_v7 = vmax.f32 %v287_v3, %v288_v4  ;;  %s618_s17 = scalar_lea.vmem %s645_s1, %s655_s18  ;;  %vm357_vm5 = vcmask 1043456   ;;  %v537_v2 = vmov 0.0  }
  0x1e   : > { %s278_s10 = scalar_lea.vmem %s646_s2, %s470_s7  ;;  %s282_s13 = scalar_lea.vmem %s647_s3, %s470_s7  ;;  %v323_v15 = vshrl.u32 %v322_v10, 7  ;;  %v504_v19 = vld [vmem:[%s618_s17] ss:$0 sm:$0xff]  ;;  %vm369_vm7 = vcmask 1040384  }
  0x1f   : > { %v294_v8 = vmax.f32 %v293_v7, %v292_v6  ;;  %v348_v12 = vld [vmem:[%s278_s10] sm:$0xf]  ;;  %s472_s20 = sshll.u32 %s655_s18, 1 }
  0x20   : > { %v349_v13 = vld [vmem:[%s282_s13] sm:$0xf]  ;;  %v324_v20 = vadd.s32 8, %v323_v15  ;;  %v325_v24 = vadd.s32 16, %v323_v15  ;;  %vm327_vm1 = vcmp.eq.s32.totalorder %v323_v15, %v504_v19  ;;  %s286_s24 = scalar_lea.vmem %s648_s4, %s472_s20 }
  0x21   : > { %v295_v9 = vrot.slane %v294_v8, 4  ;;  %v350_v16 = vsub.f32 %v348_v12, %v349_v13  ;;  %v330_v34 = vsel %vm327_vm1, %v287_v3, 0.0  ;;  %v290_v60 = vld [vmem:[%s618_s17] sm:$0x1] }
  0x22   : > { %vm328_vm2 = vcmp.eq.s32.totalorder %v324_v20, %v504_v19  ;;  %vm329_vm4 = vcmp.eq.s32.totalorder %v325_v24, %v504_v19  ;;  %vm343_vm6 = vcmp.gt.s32.totalorder %v290_v60, 0 }
  0x23   : > { %v296_v11 = vmax.f32 %v294_v8, %v295_v9  ;;  %v351_v21 = vand.u32 2147483647, %v350_v16  ;;  %v353_v22 = vmul.f32 0.5, %v350_v16  ;;  %v331_v35 = vsel %vm328_vm2, %v288_v4, 0.0 }
  0x24   : > { %v332_v36 = vsel %vm329_vm4, %v289_v5, 0.0  ;;  %v333_v38 = vadd.f32 %v331_v35, %v330_v34 }
  0x25   : > { %v297_v14 = vrot.slane %v296_v11, 2  ;;  %vm621_vm3 = vcmp.lt.f32.partialorder %v351_v21, 1.0  ;;  %v354_v29 = vmul.f32 %v353_v22, %v350_v16  ;;  %v474_v30 = vadd.f32 -0.5, %v351_v21 }
  0x26   : > { %v334_v39 = vsel %vm291_vm0, %v332_v36, 0.0 }
  0x27   : > { %v298_v17 = vmax.f32 %v296_v11, %v297_v14  ;;  %v356_v37 = vsel %vm621_vm3, %v354_v29, %v474_v30  ;;  %v335_v43 = vadd.f32 %v334_v39, %v333_v38 }
  0x28   : > { %v358_v40 = vsel %vm357_vm5, %v356_v37, 0.0 }
  0x29   : > { %v299_v18 = vrot.slane %v298_v17, 1  ;;  %v359_v44 = vrot.slane %v358_v40, 4  ;;  %v336_v49 = vrot.slane %v335_v43, 4 }
  0x2b   : > { %v300_v23 = vmax.f32 %v298_v17, %v299_v18  ;;  %v360_v50 = vadd.f32 %v359_v44, %v358_v40  ;;  %v337_v53 = vadd.f32 %v336_v49, %v335_v43 }
  0x2d   : > { %v301_v25 = vsub.f32 %v287_v3, %v300_v23  ;;  %v302_v26 = vsub.f32 %v288_v4, %v300_v23  ;;  %v303_v27 = vsub.f32 %v289_v5, %v300_v23  ;;  %v361_v54 = vrot.slane %v360_v50, 2 }
  0x2e   : > { %v338_v57 = vrot.slane %v337_v53, 2  ;;  %v473_v3 = vsel %vm343_vm6, 1.0, %v537_v2 }
  0x2f   : > { %v304_v31 = vmul.f32 1.442695, %v301_v25  ;;  %v306_v32 = vmul.f32 1.442695, %v302_v26  ;;  %v308_v33 = vmul.f32 1.442695, %v303_v27  ;;  %v362_v58 = vadd.f32 %v361_v54, %v360_v50 }
  0x30   : > { %v339_v62 = vadd.f32 %v338_v57, %v337_v53  ;;  %v346_v9 = vsub.f32 1.0, %v473_v3 }
  0x31   : > { %505 = vpow2.f32 %v304_v31  ;;  %v363_v63 = vrot.slane %v362_v58, 1 }
  0x32   : > { %507 = vpow2.f32 %v306_v32  ;;  %v340_v0 = vrot.slane %v339_v62, 1 }
  0x33   : > { %509 = vpow2.f32 %v308_v33  ;;  %v364_v1 = vadd.f32 %v363_v63, %v362_v58 }
  0x34   : > { %v341_v6 = vadd.f32 %v340_v0, %v339_v62 }
  0x35   : > { %v365_v7 = vmul.f32 %v473_v3, %v364_v1 }
  0x37   : > { %v506_v41 = vpop.eup %505  ;;  %v367_v11 = vperm.slane %v365_v7, 0 }
  0x38   : > { %v508_v42 = vpop.eup %507 }
  0x39   : > { %v510_v45 = vpop.eup %509  ;;  %v310_v46 = vadd.f32 %v508_v42, %v506_v41 }
  0x3a   : > { %v311_v47 = vsel %vm291_vm0, %v510_v45, 0.0 }
  0x3b   : > { %v312_v48 = vadd.f32 %v311_v47, %v310_v46 }
  0x3d   : > { %v313_v51 = vrot.slane %v312_v48, 4 }
  0x3f   : > { %v314_v52 = vadd.f32 %v313_v51, %v312_v48 }
  0x41   : > { %v315_v55 = vrot.slane %v314_v52, 2 }
  0x43   : > { %v316_v56 = vadd.f32 %v315_v55, %v314_v52 }
  0x45   : > { %v317_v59 = vrot.slane %v316_v56, 1 }
  0x47   : > { %v318_v61 = vadd.f32 %v317_v59, %v316_v56 }
  0x49   : > { %511 = vlog2.f32 %v318_v61 }
  0x4f   : > { %v512_v4 = vpop.eup %511 }
  0x50   : > { %v320_v5 = vmul.f32 0.6931472, %v512_v4 }
  0x52   : > { %v321_v8 = vadd.f32 %v320_v5, %v300_v23 }
  0x54   : > { %v342_v10 = vsub.f32 %v321_v8, %v341_v6 }
  0x56   : > { %v347_v12 = vmul.f32 %v346_v9, %v342_v10 }
  0x58   : > { %v370_v13 = vsel %vm369_vm7, %v347_v12, %v367_v11 }
  0x59   : > { %371 = vst [vmem:[%s286_s24] sm:$0x3] %v370_v13 }
  0x5a PF: > { %p11_p9 = scmp.ge.s32.totalorder %s580_s19, 4   ;;  %s651_s15 = smov %s531_s16 }
  0x5b   : > { %s652_s16 = smov %s589_s22  ;;  %s653_s17 = smov %s580_s19 }
  0x5c   :  { %13 = sbr.rel (!%p11_p9) target bundleno = 2 (0x2), region = 118 }

</bundles_post_ra>
